<compile_context>
chip_gen: v7x
topology: tpu7x:2x2x1
jax: 0.10.0
libtpu: 0.0.40
codegen_flags: <defaults>
</compile_context>

<pallas_src>
import jax
import jax.numpy as jnp
from jax.experimental import pallas as pl
from jax.experimental.pallas import tpu as pltpu


def _round_up(x, m):
    return ((x + m - 1) // m) * m


def _round_down(x, m):
    return (x // m) * m


def _sublane_rows(dtype):
    # Rows per packed sublane tile for a given element size.
    return {1: 32, 2: 16, 4: 8}.get(jnp.dtype(dtype).itemsize, 8)


def _vmem_capacity_bytes():
    try:
        return int(pltpu.get_tpu_info().vmem_capacity_bytes)
    except Exception:
        return 64 << 20  # conservative: v7x physical VMEM


# --------------------------------------------------------------------------
# Kernels
# --------------------------------------------------------------------------

def _ffn_kernel_scratch(x_ref, w1_ref, b1_ref, w2_ref, b2_ref, o_ref, acc_ref):
    # Used when the output dtype is not f32 (e.g. bf16): accumulate in an
    # f32 VMEM scratch, cast once on the last d_ff chunk.
    f = pl.program_id(1)

    @pl.when(f == 0)
    def _init():
        acc_ref[...] = jnp.zeros_like(acc_ref)

    h = jnp.dot(x_ref[...], w1_ref[...], preferred_element_type=jnp.float32)
    h = jnp.maximum(h + b1_ref[...], 0.0)              # bias + ReLU per chunk
    acc_ref[...] += jnp.dot(h.astype(w2_ref.dtype), w2_ref[...],
                            preferred_element_type=jnp.float32)

    @pl.when(f == pl.num_programs(1) - 1)
    def _finalize():
        o_ref[...] = (acc_ref[...] + b2_ref[...]).astype(o_ref.dtype)


def _ffn_kernel_inplace(x_ref, w1_ref, b1_ref, w2_ref, b2_ref, o_ref):
    # Used when the output dtype is f32: the output block index is constant
    # across the f axis, so the tile stays resident in VMEM; accumulate into
    # it directly and skip the scratch buffer entirely.
    f = pl.program_id(1)

    @pl.when(f == 0)
    def _init():
        o_ref[...] = jnp.broadcast_to(b2_ref[...], o_ref.shape)

    h = jnp.dot(x_ref[...], w1_ref[...], preferred_element_type=jnp.float32)
    h = jnp.maximum(h + b1_ref[...], 0.0)
    o_ref[...] += jnp.dot(h.astype(w2_ref.dtype), w2_ref[...],
                          preferred_element_type=jnp.float32)


# --------------------------------------------------------------------------
# Wrapper
# --------------------------------------------------------------------------

def feed_forward(x, w1, b1, w2, b2, *, tm=None, tf=None,
                 compute_dtype=jnp.bfloat16):
    """Fused FFN: ReLU(x @ w1 + b1) @ w2 + b2.

    x : (T, H) flattened tokens (output keeps x.dtype)
    w1: (H, F), b1: (F,)
    w2: (F, H), b2: (H,)
    tm: token tile rows (None => auto per chip generation)
    tf: cap on the d_ff reduction chunk (None => auto from VMEM budget)
    compute_dtype: MXU operand dtype (bf16 default; f32 for exact mode)
    """
    T, H = x.shape
    F = w1.shape[1]
    out_dtype = x.dtype
    cdt = jnp.dtype(compute_dtype)
    c_size = cdt.itemsize
    o_size = jnp.dtype(out_dtype).itemsize

    Hp = _round_up(H, 128)                       # lane-dense output stores
    sub = _sublane_rows(cdt)                     # sublane packing of compute dtype

    # ---- per-generation VMEM budget ---------------------------------------
    vmem_cap = _vmem_capacity_bytes()
    vmem_limit = min(vmem_cap - (8 << 20), int(vmem_cap * 0.85))
    vmem_budget = int(vmem_limit * 0.9)

    # ---- token tile --------------------------------------------------------
    if tm is None:
        # 128 MiB VMEM chips (v5e/v6e) can afford a bigger resident token tile
        # (v6e needs tm >= ~640 to stay MXU-bound on weight streaming).
        tm = 768 if vmem_cap >= (96 << 20) else 512
    tm_eff = min(_round_up(tm, sub), _round_up(T, sub))

    use_scratch = out_dtype != jnp.float32

    def _fixed_bytes(tm_e):
        # x + out tiles (double-buffered), optional acc scratch, biases.
        return (2 * tm_e * Hp * c_size
                + 2 * tm_e * Hp * o_size
                + (tm_e * Hp * 4 if use_scratch else 0)
                + 4 * Hp * 4)

    # Shrink tm until at least a 128-wide W1+W2 chunk fits double-buffered.
    min_weight_bytes = 4 * Hp * 128 * c_size + 2 * 128 * 4
    while tm_eff > sub and vmem_budget - _fixed_bytes(tm_eff) < min_weight_bytes:
        tm_eff = max(sub, _round_up(tm_eff // 2, sub))

    Tp = _round_up(T, tm_eff)
    # TODO(synk): for v7x decode shapes with a single token tile, split the
    # output columns / reduction across the 2 TensorCores for megacore use.

    # ---- d_ff reduction chunk from the remaining VMEM budget ---------------
    budget = vmem_budget - _fixed_bytes(tm_eff)
    tf_max = budget // (4 * Hp * c_size + 8)     # W1+W2 double-buffered (+ b1)
    tf_auto = max(128, _round_down(int(tf_max), 128))
    if tf is not None:
        tf_auto = min(tf_auto, _round_up(tf, 128))
    tf_eff = min(tf_auto, _round_up(F, 128))
    Fp = _round_up(F, tf_eff)

    # ---- operand prep (skip pad/cast work when already aligned) ------------
    # NOTE: in a real model, cast+pad the weights once at init; here the pads
    # are trace-time no-ops whenever H/F are already multiples of 128/tf.
    xw = x.astype(cdt)
    if Tp != T or Hp != H:
        xw = jnp.pad(xw, ((0, Tp - T), (0, Hp - H)))
    w1w = w1.astype(cdt)
    if Hp != H or Fp != F:
        w1w = jnp.pad(w1w, ((0, Hp - H), (0, Fp - F)))
    w2w = w2.astype(cdt)
    if Fp != F or Hp != H:
        w2w = jnp.pad(w2w, ((0, Fp - F), (0, Hp - H)))
    b1w = b1.astype(jnp.float32)                 # biases stay f32 (added to f32 acc)
    if Fp != F:
        b1w = jnp.pad(b1w, (0, Fp - F))
    b1w = b1w.reshape(1, Fp)
    b2w = b2.astype(jnp.float32)
    if Hp != H:
        b2w = jnp.pad(b2w, (0, Hp - H))
    b2w = b2w.reshape(1, Hp)

    grid = (Tp // tm_eff, Fp // tf_eff)
    n_tok_tiles = grid[0]

    cost = pl.CostEstimate(
        flops=4 * Tp * Hp * Fp,
        transcendentals=0,
        bytes_accessed=(Tp * Hp * c_size                              # x read
                        + n_tok_tiles * 2 * Hp * Fp * c_size          # W1+W2 re-stream
                        + n_tok_tiles * Fp * 4 + Hp * 4               # biases
                        + Tp * Hp * o_size),                          # output write
    )

    in_specs = [
        pl.BlockSpec((tm_eff, Hp), lambda i, f: (i, 0)),   # x tile (resident over f)
        pl.BlockSpec((Hp, tf_eff), lambda i, f: (0, f)),   # W1 chunk
        pl.BlockSpec((1, tf_eff), lambda i, f: (0, f)),    # b1 chunk
        pl.BlockSpec((tf_eff, Hp), lambda i, f: (f, 0)),   # W2 chunk
        pl.BlockSpec((1, Hp), lambda i, f: (0, 0)),        # b2
    ]
    out_spec = pl.BlockSpec((tm_eff, Hp), lambda i, f: (i, 0))

    if use_scratch:
        kernel = _ffn_kernel_scratch
        scratch = [pltpu.VMEM((tm_eff, Hp), jnp.float32)]
    else:
        kernel = _ffn_kernel_inplace
        scratch = []

    out = pl.pallas_call(
        kernel,
        out_shape=jax.ShapeDtypeStruct((Tp, Hp), out_dtype),
        grid_spec=pltpu.PrefetchScalarGridSpec(
            num_scalar_prefetch=0,
            grid=grid,
            in_specs=in_specs,
            out_specs=out_spec,
            scratch_shapes=scratch,
        ),
        compiler_params=pltpu.CompilerParams(
            # tokens parallel (megacore-shardable), d_ff reduction last/arbitrary
            dimension_semantics=("parallel", "arbitrary"),
            vmem_limit_bytes=vmem_limit,
        ),
        cost_estimate=cost,
    )(xw, w1w, b1w, w2w, b2w)

    if Tp != T or Hp != H:
        out = out[:T, :H]
    return out


def feed_forward_ref(x, w1, b1, w2, b2):
    h = jnp.maximum(x.astype(jnp.float32) @ w1.astype(jnp.float32)
                    + b1.astype(jnp.float32), 0.0)
    return h @ w2.astype(jnp.float32) + b2.astype(jnp.float32)


if __name__ == "__main__":
    # --- Test 1: small shapes consistent with the module, exact f32 path ----
    batch, seq, hidden_size, d_ff = 2, 8, 32, 64
    key = jax.random.PRNGKey(0)
    kx, k1, k2, k3, k4 = jax.random.split(key, 5)

    x_bsh = jax.random.normal(kx, (batch, seq, hidden_size), dtype=jnp.float32)
    w1 = jax.random.normal(k1, (hidden_size, d_ff), dtype=jnp.float32) * 0.05
    b1 = jax.random.normal(k2, (d_ff,), dtype=jnp.float32) * 0.05
    w2 = jax.random.normal(k3, (d_ff, hidden_size), dtype=jnp.float32) * 0.05
    b2 = jax.random.normal(k4, (hidden_size,), dtype=jnp.float32) * 0.05

    x = x_bsh.reshape(batch * seq, hidden_size)   # (tokens, hidden)
    ref = feed_forward_ref(x, w1, b1, w2, b2)

    out = jax.block_until_ready(
        feed_forward(x, w1, b1, w2, b2, compute_dtype=jnp.float32))
    assert out.shape == (batch * seq, hidden_size)
    assert jnp.allclose(out, ref, atol=1e-5, rtol=1e-5), "mismatch (f32 exact path)"
    _ = out.reshape(batch, seq, hidden_size)       # mirror module I/O

    # --- Test 1b: same shapes, default bf16 MXU path -------------------------
    out_bf = jax.block_until_ready(feed_forward(x, w1, b1, w2, b2))
    assert out_bf.dtype == x.dtype
    assert jnp.allclose(out_bf, ref, atol=3e-2, rtol=3e-2), "mismatch (bf16 compute)"

    # --- Test 2: ragged shapes exercising the tiled d_ff reduction (f32 out,
    #     inplace-accumulate kernel, bf16 compute) ----------------------------
    T2, H2, F2 = 48, 160, 300
    kx2, k5, k6, k7, k8 = jax.random.split(jax.random.PRNGKey(1), 5)
    x2 = jax.random.normal(kx2, (T2, H2), dtype=jnp.float32)
    w1b = jax.random.normal(k5, (H2, F2), dtype=jnp.float32) * 0.05
    b1b = jax.random.normal(k6, (F2,), dtype=jnp.float32) * 0.05
    w2b = jax.random.normal(k7, (F2, H2), dtype=jnp.float32) * 0.05
    b2b = jax.random.normal(k8, (H2,), dtype=jnp.float32) * 0.05

    out2 = jax.block_until_ready(
        feed_forward(x2, w1b, b1b, w2b, b2b, tm=64, tf=128))
    ref2 = feed_forward_ref(x2, w1b, b1b, w2b, b2b)
    assert out2.shape == (T2, H2)
    assert jnp.allclose(out2, ref2, atol=3e-2, rtol=3e-2), "mismatch (tiled, f32 out)"

    # --- Test 3: bf16 inputs/outputs (f32 scratch accumulator path) ----------
    T3, H3, F3 = 40, 128, 256
    kx3, k9, k10, k11, k12 = jax.random.split(jax.random.PRNGKey(2), 5)
    x3 = jax.random.normal(kx3, (T3, H3), dtype=jnp.float32).astype(jnp.bfloat16)
    w1c = (jax.random.normal(k9, (H3, F3), dtype=jnp.float32) * 0.05).astype(jnp.bfloat16)
    b1c = (jax.random.normal(k10, (F3,), dtype=jnp.float32) * 0.05).astype(jnp.bfloat16)
    w2c = (jax.random.normal(k11, (F3, H3), dtype=jnp.float32) * 0.05).astype(jnp.bfloat16)
    b2c = (jax.random.normal(k12, (H3,), dtype=jnp.float32) * 0.05).astype(jnp.bfloat16)

    out3 = jax.block_until_ready(feed_forward(x3, w1c, b1c, w2c, b2c, tf=128))
    ref3 = feed_forward_ref(x3, w1c, b1c, w2c, b2c)
    assert out3.shape == (T3, H3) and out3.dtype == jnp.bfloat16
    assert jnp.allclose(out3.astype(jnp.float32), ref3, atol=5e-2, rtol=5e-2), \
        "mismatch (bf16 out, scratch path)"

    print("KERNEL_OK")
</pallas_src>

<mosaic_0001>
module attributes {stable_mosaic.version = 11 : i64} {
  func.func @_ffn_kernel_inplace(%arg0: i32, %arg1: i32, %arg2: memref<16x128xf32, #tpu.memory_space<vmem>>, %arg3: memref<128x128xf32, #tpu.memory_space<vmem>>, %arg4: memref<1x128xf32, #tpu.memory_space<vmem>>, %arg5: memref<128x128xf32, #tpu.memory_space<vmem>>, %arg6: memref<1x128xf32, #tpu.memory_space<vmem>>, %arg7: memref<16x128xf32, #tpu.memory_space<vmem>>) attributes {dimension_semantics = [#tpu.dimension_semantics<parallel>, #tpu.dimension_semantics<arbitrary>], iteration_bounds = array<i64: 1, 1>, scalar_prefetch = 0 : i64, scratch_operands = 0 : i64, tpu.core_type = #tpu.core_type<tc>, window_params = [{transform_indices = @transform_0, window_bounds = array<i64: 16, 128>}, {transform_indices = @transform_1, window_bounds = array<i64: 128, 128>}, {transform_indices = @transform_2, window_bounds = array<i64: 1, 128>}, {transform_indices = @transform_3, window_bounds = array<i64: 128, 128>}, {pipeline_mode = #tpu.pipeline_mode<synchronous>, transform_indices = @transform_4, window_bounds = array<i64: 1, 128>}, {transform_indices = @transform_5, window_bounds = array<i64: 16, 128>}]} {
    %c0_i32 = arith.constant 0 : i32
    %0 = arith.cmpi eq, %arg1, %c0_i32 : i32
    %1 = arith.extui %0 : i1 to i32
    %c0_i32_0 = arith.constant 0 : i32
    %2 = arith.cmpi ne, %1, %c0_i32_0 : i32
    scf.if %2 {
      %c0_14 = arith.constant 0 : index
      %c0_15 = arith.constant 0 : index
      %16 = vector.load %arg6[%c0_14, %c0_15] : memref<1x128xf32, #tpu.memory_space<vmem>>, vector<1x128xf32>
      %17 = vector.shape_cast %16 : vector<1x128xf32> to vector<1x128xf32>
      %18 = vector.broadcast %17 : vector<1x128xf32> to vector<16x128xf32>
      %c0_16 = arith.constant 0 : index
      %c0_17 = arith.constant 0 : index
      %19 = vector.load %arg7[%c0_16, %c0_17] : memref<16x128xf32, #tpu.memory_space<vmem>>, vector<16x128xf32>
      tpu.vector_store %arg7[%c0_16, %c0_17], %18 {strides = array<i32>} : memref<16x128xf32, #tpu.memory_space<vmem>>, vector<16x128xf32>,
    } else {
    }
    %c0 = arith.constant 0 : index
    %c0_1 = arith.constant 0 : index
    %3 = vector.load %arg2[%c0, %c0_1] : memref<16x128xf32, #tpu.memory_space<vmem>>, vector<16x128xf32>
    %c0_2 = arith.constant 0 : index
    %c0_3 = arith.constant 0 : index
    %4 = vector.load %arg3[%c0_2, %c0_3] : memref<128x128xf32, #tpu.memory_space<vmem>>, vector<128x128xf32>
    %cst = arith.constant dense<0.000000e+00> : vector<16x128xf32>
    %5 = tpu.matmul %3, %4, %cst {dimension_numbers = #tpu.dot_dimension_numbers<[1], [0], [0], [1], [0, 0, 1, 1], [], []>} : vector<16x128xf32>, vector<128x128xf32>, vector<16x128xf32> -> vector<16x128xf32>
    %c0_4 = arith.constant 0 : index
    %c0_5 = arith.constant 0 : index
    %6 = vector.load %arg4[%c0_4, %c0_5] : memref<1x128xf32, #tpu.memory_space<vmem>>, vector<1x128xf32>
    %7 = vector.broadcast %6 : vector<1x128xf32> to vector<16x128xf32>
    %8 = arith.addf %5, %7 : vector<16x128xf32>
    %cst_6 = arith.constant 0.000000e+00 : f32
    %9 = vector.broadcast %cst_6 : f32 to vector<16x128xf32>
    %10 = arith.maximumf %8, %9 : vector<16x128xf32>
    %c0_7 = arith.constant 0 : index
    %c0_8 = arith.constant 0 : index
    %11 = vector.load %arg7[%c0_7, %c0_8] : memref<16x128xf32, #tpu.memory_space<vmem>>, vector<16x128xf32>
    %c0_9 = arith.constant 0 : index
    %c0_10 = arith.constant 0 : index
    %12 = vector.load %arg5[%c0_9, %c0_10] : memref<128x128xf32, #tpu.memory_space<vmem>>, vector<128x128xf32>
    %cst_11 = arith.constant dense<0.000000e+00> : vector<16x128xf32>
    %13 = tpu.matmul %10, %12, %cst_11 {dimension_numbers = #tpu.dot_dimension_numbers<[1], [0], [0], [1], [0, 0, 1, 1], [], []>} : vector<16x128xf32>, vector<128x128xf32>, vector<16x128xf32> -> vector<16x128xf32>
    %14 = arith.addf %11, %13 : vector<16x128xf32>
    %c0_12 = arith.constant 0 : index
    %c0_13 = arith.constant 0 : index
    %15 = vector.load %arg7[%c0_12, %c0_13] : memref<16x128xf32, #tpu.memory_space<vmem>>, vector<16x128xf32>
    tpu.vector_store %arg7[%c0_12, %c0_13], %14 {strides = array<i32>} : memref<16x128xf32, #tpu.memory_space<vmem>>, vector<16x128xf32>,
    return
  }
  func.func @transform_0(%arg0: i32, %arg1: i32) -> (i32, i32) {
    %c0_i32 = arith.constant 0 : i32
    %c0_i32_0 = arith.constant 0 : i32
    return %arg0, %c0_i32 : i32, i32
  }
  func.func @transform_1(%arg0: i32, %arg1: i32) -> (i32, i32) {
    %c0_i32 = arith.constant 0 : i32
    %c0_i32_0 = arith.constant 0 : i32
    return %c0_i32, %arg1 : i32, i32
  }
  func.func @transform_2(%arg0: i32, %arg1: i32) -> (i32, i32) {
    %c0_i32 = arith.constant 0 : i32
    %c0_i32_0 = arith.constant 0 : i32
    return %c0_i32, %arg1 : i32, i32
  }
  func.func @transform_3(%arg0: i32, %arg1: i32) -> (i32, i32) {
    %c0_i32 = arith.constant 0 : i32
    %c0_i32_0 = arith.constant 0 : i32
    return %arg1, %c0_i32 : i32, i32
  }
  func.func @transform_4(%arg0: i32, %arg1: i32) -> (i32, i32) {
    %c0_i32 = arith.constant 0 : i32
    %c0_i32_0 = arith.constant 0 : i32
    %c0_i32_1 = arith.constant 0 : i32
    return %c0_i32, %c0_i32_0 : i32, i32
  }
  func.func @transform_5(%arg0: i32, %arg1: i32) -> (i32, i32) {
    %c0_i32 = arith.constant 0 : i32
    %c0_i32_0 = arith.constant 0 : i32
    return %arg0, %c0_i32 : i32, i32
  }
}

</mosaic_0001>

<bundles_post_ra>
// kernel: tpu_custom_call.1
= control target key start
LH: loop header
LB: loop body
LE: loop exit
PB: predicated region body
PF: predicated region fallthrough
CT: control target
= control target key end

     0   :  { %10 = vsyncpa [#allocation3], 0  ;;  %s673_s0 = inlined_call_operand.hbm [shape: f32[16,128], index: 0, kind: input, shape index: {}]   ;;  %s674_s1 = inlined_call_operand.hbm [shape: f32[128,128], index: 1, kind: input, shape index: {}]   ;;  %s675_s2 = inlined_call_operand.vmem [shape: f32[1,128], index: 2, kind: input, shape index: {}]   ;;  %s676_s3 = inlined_call_operand.hbm [shape: f32[128,128], index: 3, kind: input, shape index: {}]   ;;  %s677_s4 = inlined_call_operand.vmem [shape: f32[1,128], index: 4, kind: input, shape index: {}]   ;;  %s678_s5 = inlined_call_operand.hbm [shape: f32[16,128], index: 5, kind: output, shape index: {}]  }
   0x1   :  { %11 = vsyncpa [#allocation6], 0 }
   0x2   :  { %12 = vsyncpa [#allocation4], 0  ;;  %s564_s18 = smov [#allocation5]   ;;  %s565_s20 = smov [#allocation2]  }
   0x3   :  { %s30_s19 = sshll.u32 %s564_s18, 4  ;;  %s18_s21 = sshll.u32 %s565_s20, 4  ;;  %s31_s19 = int_to_ptr.vmem [resolvable:$true] %s30_s19  ;;  %s600_s21 = int_to_ptr.vmem [resolvable:$true] %s18_s21 }
   0x4   :  { %s470_s24 = scalar_lea.hbm %s674_s1, 2048 }
   0x5   :  { %p471_p0 = scmp.ne.s32.totalorder %s674_s1, %s470_s24  ;;  %p474_p1 = scmp.lt.u32.totalorder %s470_s24, %s674_s1 }
   0x7   :  { %p476_p2 = pnand %p474_p1, %p471_p0 }
   0x9   :  { %479 = shalt.err (!%p476_p2)
}
   0xa   :  { %s480_s29 = scalar_lea.vmem %s31_s19, 2048  ;;  %p485_p4 = scmp.lt.s32.totalorder %s31_s19, %s31_s19 }
   0xb   :  { %p481_p3 = scmp.ne.s32.totalorder %s31_s19, %s480_s29  ;;  %p486_p5 = scmp.lt.s32.totalorder %s480_s29, %s480_s29 }
   0xd   :  { %p487_p6 = por %p486_p5, %p485_p4 }
   0xf   :  { %p488_p7 = pnand %p487_p6, %p481_p3 }
  0x11   :  { %491 = shalt.err (!%p488_p7)
}
  0x12   :  { %s566_s30 = smov 128   ;;  %s567_s6 = smov 8  }
  0x13   :  { %36 = dma.hbm_to_vmem [thread:$0]  %s674_s1, 2048, %s31_s19, [#allocation6], %s566_s30, %s566_s30, %s567_s6  }
  0x14   :  { %s492_s11 = scalar_lea.hbm %s673_s0, 256 }
  0x15   :  { %p493_p8 = scmp.ne.s32.totalorder %s673_s0, %s492_s11  ;;  %p496_p9 = scmp.lt.u32.totalorder %s492_s11, %s673_s0 }
  0x17   :  { %p498_p10 = pnand %p496_p9, %p493_p8 }
  0x19   :  { %501 = shalt.err (!%p498_p10)
}
  0x1a   :  { %s502_s16 = scalar_lea.vmem %s600_s21, 256  ;;  %p507_p12 = scmp.lt.s32.totalorder %s600_s21, %s600_s21 }
  0x1b   :  { %p503_p11 = scmp.ne.s32.totalorder %s600_s21, %s502_s16  ;;  %p508_p13 = scmp.lt.s32.totalorder %s502_s16, %s502_s16 }
  0x1d   :  { %p509_p0 = por %p508_p13, %p507_p12 }
  0x1f   :  { %p510_p1 = pnand %p509_p0, %p503_p11 }
  0x21   :  { %513 = shalt.err (!%p510_p1)
}
  0x22   :  { %24 = dma.hbm_to_vmem [thread:$0]  %s673_s0, 256, %s600_s21, [#allocation3], %s566_s30, %s566_s30, %s567_s6  }
  0x23   :  { %s568_s18 = smov [#allocation7]   ;;  %s514_s23 = scalar_lea.hbm %s676_s3, 2048 }
  0x24   :  { %s44_s19 = sshll.u32 %s568_s18, 4  ;;  %p515_p2 = scmp.ne.s32.totalorder %s676_s3, %s514_s23  ;;  %s45_s19 = int_to_ptr.vmem [resolvable:$true] %s44_s19 }
  0x25   :  { %p518_p3 = scmp.lt.u32.totalorder %s514_s23, %s676_s3 }
  0x27   :  { %p520_p4 = pnand %p518_p3, %p515_p2 }
  0x29   :  { %523 = shalt.err (!%p520_p4)
}
  0x2a   :  { %s524_s28 = scalar_lea.vmem %s45_s19, 2048  ;;  %p529_p6 = scmp.lt.s32.totalorder %s45_s19, %s45_s19 }
  0x2b   :  { %p525_p5 = scmp.ne.s32.totalorder %s45_s19, %s524_s28  ;;  %p530_p7 = scmp.lt.s32.totalorder %s524_s28, %s524_s28 }
  0x2d   :  { %p531_p8 = por %p530_p7, %p529_p6 }
  0x2f   :  { %p532_p9 = pnand %p531_p8, %p525_p5 }
  0x31   :  { %535 = shalt.err (!%p532_p9)
}
  0x32   :  { %50 = dma.hbm_to_vmem [thread:$0]  %s676_s3, 2048, %s45_s19, [#allocation6], %s566_s30, %s566_s30, %s567_s6  }
  0x33   :  { %558 = dma.done.wait [#allocation3], 256  }
  0x34   :  { %559 = vsyncadd [#allocation3], 4294967040 }
  0x35   :  { %560 = dma.done.wait [#allocation6], 4096  }
  0x36   :  { %561 = vsyncadd [#allocation6], 4294963200  ;;  %v77_v0 = vld [vmem:[#allocation5] sm:$0xff]  ;;  %v78_v1 = vld [vmem:[#allocation5 + $0x8] sm:$0xff]  ;;  %s569_s9 = smov [#allocation8]  }
  0x37   :  { %v79_v2 = vld [vmem:[#allocation5 + $0x10] sm:$0xff]  ;;  %v400_v3 = vpack.c.bf16 %v78_v1, %v77_v0  ;;  %v80_v4 = vld [vmem:[#allocation5 + $0x18] sm:$0xff]  ;;  %v81_v6 = vld [vmem:[#allocation5 + $0x20] sm:$0xff]  ;;  %s279_s10 = sshll.u32 %s569_s9, 4  ;;  %s280_s10 = int_to_ptr.vmem [resolvable:$true] %s279_s10 }
  0x38   :  { %v404_v5 = vpack.c.bf16 %v80_v4, %v79_v2  ;;  %v82_v7 = vld [vmem:[#allocation5 + $0x28] sm:$0xff]  ;;  %v83_v9 = vld [vmem:[#allocation5 + $0x30] sm:$0xff]  ;;  %v84_v10 = vld [vmem:[#allocation5 + $0x38] sm:$0xff]  ;;  %p541_p11 = scmp.lt.s32.totalorder %s280_s10, %s280_s10 }
  0x39   :  { %401 = vmatprep.subr.bf16.mxu0 %v400_v3  ;;  %v408_v8 = vpack.c.bf16 %v82_v7, %v81_v6  ;;  %v75_v11 = vld [vmem:[#allocation2] sm:$0xff]  ;;  %v179_v12 = vld [vmem:[#allocation7] sm:$0xff]  ;;  %v180_v13 = vld [vmem:[#allocation7 + $0x8] sm:$0xff]  ;;  %v412_v20 = vpack.c.bf16 %v84_v10, %v83_v9 }
  0x3a   :  { %403 = vmatpush3.bf16.msra.mxu0 %v400_v3  ;;  %362 = vmatprep.mubr.f32.mxu0 %v75_v11  ;;  %v181_v14 = vld [vmem:[#allocation7 + $0x10] sm:$0xff]  ;;  %v432_v15 = vpack.c.bf16 %v180_v13, %v179_v12  ;;  %v182_v16 = vld [vmem:[#allocation7 + $0x18] sm:$0xff]  ;;  %v183_v18 = vld [vmem:[#allocation7 + $0x20] sm:$0xff] }
  0x3b   :  { %405 = vmatprep.subr.bf16.mxu0 %v404_v5  ;;  %v436_v17 = vpack.c.bf16 %v182_v16, %v181_v14  ;;  %v184_v19 = vld [vmem:[#allocation7 + $0x28] sm:$0xff]  ;;  %v85_v21 = vld [vmem:[#allocation5 + $0x40] sm:$0xff]  ;;  %v185_v24 = vld [vmem:[#allocation7 + $0x30] sm:$0xff] }
  0x3c   :  { %433 = vmatprep.subr.bf16.mxu1 %v432_v15  ;;  %v86_v22 = vld [vmem:[#allocation5 + $0x48] sm:$0xff]  ;;  %v440_v23 = vpack.c.bf16 %v184_v19, %v183_v18  ;;  %v186_v25 = vld [vmem:[#allocation7 + $0x38] sm:$0xff]  ;;  %v87_v27 = vld [vmem:[#allocation5 + $0x50] sm:$0xff] }
  0x3d   :  { %435 = vmatpush3.bf16.msra.mxu1 %v432_v15  ;;  %v416_v26 = vpack.c.bf16 %v86_v22, %v85_v21  ;;  %v88_v28 = vld [vmem:[#allocation5 + $0x58] sm:$0xff]  ;;  %v444_v29 = vpack.c.bf16 %v186_v25, %v185_v24  ;;  %v187_v30 = vld [vmem:[#allocation7 + $0x40] sm:$0xff]  ;;  %v188_v31 = vld [vmem:[#allocation7 + $0x48] sm:$0xff] }
  0x3e   :  { %407 = vmatpush3.bf16.msra.mxu0 %v404_v5  ;;  %437 = vmatprep.subr.bf16.mxu1 %v436_v17  ;;  %v420_v32 = vpack.c.bf16 %v88_v28, %v87_v27  ;;  %v89_v33 = vld [vmem:[#allocation5 + $0x60] sm:$0xff]  ;;  %v90_v34 = vld [vmem:[#allocation5 + $0x68] sm:$0xff]  ;;  %v448_v35 = vpack.c.bf16 %v188_v31, %v187_v30  ;;  %v189_v36 = vld [vmem:[#allocation7 + $0x50] sm:$0xff] }
  0x3f   :  { %409 = vmatprep.subr.bf16.mxu0 %v408_v8  ;;  %v190_v37 = vld [vmem:[#allocation7 + $0x58] sm:$0xff]  ;;  %v424_v38 = vpack.c.bf16 %v90_v34, %v89_v33  ;;  %v91_v39 = vld [vmem:[#allocation5 + $0x70] sm:$0xff]  ;;  %v191_v42 = vld [vmem:[#allocation7 + $0x60] sm:$0xff] }
  0x40   :  { %v92_v40 = vld [vmem:[#allocation5 + $0x78] sm:$0xff]  ;;  %v452_v41 = vpack.c.bf16 %v190_v37, %v189_v36  ;;  %v192_v43 = vld [vmem:[#allocation7 + $0x68] sm:$0xff]  ;;  %v193_v47 = vld [vmem:[#allocation7 + $0x70] sm:$0xff] }
  0x41   :  { %439 = vmatpush3.bf16.msra.mxu1 %v436_v17  ;;  %v428_v44 = vpack.c.bf16 %v92_v40, %v91_v39  ;;  %v456_v45 = vpack.c.bf16 %v192_v43, %v191_v42  ;;  %v76_v46 = vld [vmem:[#allocation2 + $0x8] sm:$0xff]  ;;  %v293_v50 = vld [vmem:[%s675_s2] ss:$0 sm:$0xff]  ;;  %s536_s2 = scalar_lea.vmem %s280_s10, 256 }
  0x42   :  { %411 = vmatpush3.bf16.msra.mxu0 %v408_v8  ;;  %441 = vmatprep.subr.bf16.mxu1 %v440_v23  ;;  %v194_v48 = vld [vmem:[#allocation7 + $0x78] sm:$0xff]  ;;  %v292_v57 = vld [vmem:[%s677_s4] ss:$0 sm:$0xff]  ;;  %p537_p10 = scmp.ne.s32.totalorder %s280_s10, %s536_s2  ;;  %p542_p12 = scmp.lt.s32.totalorder %s536_s2, %s536_s2 }
  0x43   :  { %413 = vmatprep.subr.bf16.mxu0 %v412_v20  ;;  %v460_v49 = vpack.c.bf16 %v194_v48, %v193_v47 }
  0x44   :  { %p543_p13 = por %p542_p12, %p541_p11 }
  0x45   :  { %443 = vmatpush3.bf16.msra.mxu1 %v440_v23 }
  0x46   :  { %415 = vmatpush3.bf16.msra.mxu0 %v412_v20  ;;  %445 = vmatprep.subr.bf16.mxu1 %v444_v29  ;;  %p544_p0 = pnand %p543_p13, %p537_p10 }
  0x47   :  { %417 = vmatprep.subr.bf16.mxu0 %v416_v26 }
  0x49   :  { %447 = vmatpush3.bf16.msra.mxu1 %v444_v29 }
  0x4a   :  { %419 = vmatpush3.bf16.msra.mxu0 %v416_v26  ;;  %449 = vmatprep.subr.bf16.mxu1 %v448_v35 }
  0x4b   :  { %421 = vmatprep.subr.bf16.mxu0 %v420_v32 }
  0x4d   :  { %451 = vmatpush3.bf16.msra.mxu1 %v448_v35 }
  0x4e   :  { %423 = vmatpush3.bf16.msra.mxu0 %v420_v32  ;;  %453 = vmatprep.subr.bf16.mxu1 %v452_v41 }
  0x4f   :  { %425 = vmatprep.subr.bf16.mxu0 %v424_v38 }
  0x51   :  { %455 = vmatpush3.bf16.msra.mxu1 %v452_v41 }
  0x52   :  { %427 = vmatpush3.bf16.msra.mxu0 %v424_v38  ;;  %457 = vmatprep.subr.bf16.mxu1 %v456_v45 }
  0x53   :  { %429 = vmatprep.subr.bf16.mxu0 %v428_v44 }
  0x55   :  { %459 = vmatpush3.bf16.msra.mxu1 %v456_v45 }
  0x56   :  { %431 = vmatpush3.bf16.msra.mxu0 %v428_v44  ;;  %461 = vmatprep.subr.bf16.mxu1 %v460_v49 }
  0x59   :  { %363 = vmatmul.mubr.f32.vlgmr.msra.gmra.mrb[0].mxu0 %v76_v46  ;;  %463 = vmatpush3.bf16.msra.mxu1 %v460_v49 }
 0x12c   :  { %v364_v51 = vpop.f32.mrb[0].mxu0 }
 0x12d   :  { %v172_v52 = vadd.f32 %v364_v51, %v293_v50  ;;  %v166_v53 = vpop.f32.mrb[1].mxu0 }
 0x12e   :  { %v167_v54 = vadd.f32 %v293_v50, %v166_v53 }
 0x12f   :  { %v176_v56 = vmax.f32 %v172_v52, 0.0 }
 0x130   :  { %v175_v55 = vmax.f32 %v167_v54, 0.0 }
 0x132   :  { %397 = vmatprep.mubr.f32.mxu1 %v175_v55 }
 0x133   :  { %398 = vmatmul.mubr.f32.vlgmr.msra.gmra.mrb[0].mxu1 %v176_v56 }
 0x206   :  { %v399_v58 = vpop.f32.mrb[0].mxu1 }
 0x207   :  { %v271_v59 = vadd.f32 %v399_v58, %v292_v57  ;;  %v261_v60 = vpop.f32.mrb[1].mxu1 }
 0x208   :  { %v270_v61 = vadd.f32 %v292_v57, %v261_v60 }
 0x209   :  { %273 = vst [vmem:[#allocation8 + $0x8] sm:$0xff] %v271_v59 }
 0x20a   :  { %272 = vst [vmem:[#allocation8] sm:$0xff] %v270_v61 }
 0x20b   :  { %547 = shalt.err (!%p544_p0)
}
 0x20c   :  { %s548_s4 = scalar_lea.hbm %s678_s5, 256 }
 0x20d   :  { %p549_p1 = scmp.ne.s32.totalorder %s678_s5, %s548_s4  ;;  %p552_p2 = scmp.lt.u32.totalorder %s548_s4, %s678_s5 }
 0x20f   :  { %p554_p3 = pnand %p552_p2, %p549_p1 }
 0x211   :  { %557 = shalt.err (!%p554_p3)
}
 0x212   :  { %285 = dma.vmem_to_hbm [thread:$0]  %s280_s10, 256, %s678_s5, [#allocation4], %s566_s30, %s566_s30, %s567_s6  }
 0x213   :  { %562 = dma.done.wait [#allocation4], 256  }
 0x214   :  { %563 = vsyncadd [#allocation4], 4294967040 }
 0x215   :  { %289 = vsyncpa [#allocation3], 1 }
 0x216   :  { %290 = vsyncpa [#allocation6], 1 }
 0x217   :  { %291 = vsyncpa [#allocation4], 1 }

</bundles_post_ra>
